<compile_context>
chip_gen: v6e
topology: v6e:2x2x1
jax: 0.10.0
libtpu: 0.0.40
codegen_flags: <defaults>
</compile_context>

<pallas_src>
import functools

import jax
import jax.numpy as jnp
from jax.experimental import pallas as pl
from jax.experimental.pallas import tpu as pltpu


NUM_FREQS = 4          # L
IN_DIMS = 3
OUT_DIMS = IN_DIMS * (1 + 2 * NUM_FREQS)   # identity + sin/cos per frequency


def _round_up(v, m):
    return ((v + m - 1) // m) * m


def _freq_embed_kernel(x_ref, o_ref, *, in_dims, num_freqs):
    """Lane-dense hot path: x_ref is (in_dims, TILE_N), o_ref is (out_dims, TILE_N)."""
    x = x_ref[...]                                        # (in_dims, tile_n) f32
    # Identity band.
    o_ref[0:in_dims, :] = x.astype(o_ref.dtype)

    # Base frequency band on the EUP once; higher bands via the angle-doubling
    # recurrence (VPU muls/adds only), keeping the single EUP slot off the
    # critical path.
    s = jnp.sin(x)
    c = jnp.cos(x)
    for k in range(num_freqs):                            # static Python unroll
        base = (1 + 2 * k) * in_dims
        o_ref[base:base + in_dims, :] = s.astype(o_ref.dtype)
        o_ref[base + in_dims:base + 2 * in_dims, :] = c.astype(o_ref.dtype)
        if k + 1 < num_freqs:
            # sin(2a) = 2 sin(a) cos(a) ; cos(2a) = 2 cos(a)^2 - 1
            s, c = 2.0 * s * c, 2.0 * c * c - 1.0


def frequency_embedding(x, *, num_freqs=NUM_FREQS, tile_n=8192, out_dtype=None):
    """x: (N, in_dims) float32 -> (N, in_dims * (1 + 2*num_freqs))."""
    n, in_dims = x.shape
    out_dims = in_dims * (1 + 2 * num_freqs)
    out_dtype = x.dtype if out_dtype is None else out_dtype

    # Lane-axis tiling: tile must be a multiple of 128; pad N up to a multiple
    # of the tile so any N is accepted (no divisibility requirement).
    tile = min(tile_n, _round_up(n, 128))
    tile = _round_up(tile, 128)
    n_pad = _round_up(n, tile)

    # Layout plumbing in the wrapper: put N on the lane (last) axis.
    xt = jnp.pad(jnp.transpose(x, (1, 0)), ((0, 0), (0, n_pad - n)))

    kernel = functools.partial(
        _freq_embed_kernel, in_dims=in_dims, num_freqs=num_freqs)

    out_t = pl.pallas_call(
        kernel,
        out_shape=jax.ShapeDtypeStruct((out_dims, n_pad), out_dtype),
        grid_spec=pltpu.PrefetchScalarGridSpec(
            num_scalar_prefetch=0,
            grid=(n_pad // tile,),
            # Second-to-last block dims (in_dims / out_dims) equal the full
            # array dims; last dim is a multiple of 128 -> (8,128) rule OK.
            in_specs=[pl.BlockSpec((in_dims, tile), lambda i: (0, i))],
            out_specs=pl.BlockSpec((out_dims, tile), lambda i: (0, i)),
        ),
        compiler_params=pltpu.CompilerParams(
            dimension_semantics=("parallel",),       # megacore-shardable on v7x
            vmem_limit_bytes=32 * 1024 * 1024,       # safe on v5e/v6e/v7x; blocks are tiny
        ),
    )(xt)

    # Back to the PyTorch-style (N, out_dims) layout; consumers that accept
    # channel-major output can keep out_t directly and skip this transpose.
    return jnp.transpose(out_t[:, :n], (1, 0))


def frequency_embedding_ref(x, *, num_freqs=NUM_FREQS):
    parts = [x]
    for k in range(num_freqs):
        f = float(2 ** k)
        parts.append(jnp.sin(x * f))
        parts.append(jnp.cos(x * f))
    return jnp.concatenate(parts, axis=-1)


if __name__ == "__main__":
    key = jax.random.PRNGKey(0)
    n = 300                                   # deliberately not a multiple of the tile
    x = jax.random.normal(key, (n, IN_DIMS), dtype=jnp.float32)

    out = jax.block_until_ready(frequency_embedding(x))
    ref = frequency_embedding_ref(x)

    assert out.shape == (n, OUT_DIMS), out.shape
    # Slightly looser tolerance: the angle-doubling recurrence drifts a few ulp
    # at the highest band vs exact sin(2^k x) (well under 1e-4).
    assert jnp.allclose(out, ref, atol=1e-4, rtol=1e-4), "mismatch vs reference"

    print("KERNEL_OK")
</pallas_src>

<mosaic_0001>
module attributes {stable_mosaic.version = 11 : i64} {
  func.func @_freq_embed_kernel(%arg0: i32, %arg1: memref<3x384xf32, #tpu.memory_space<vmem>>, %arg2: memref<27x384xf32, #tpu.memory_space<vmem>>) attributes {dimension_semantics = [#tpu.dimension_semantics<parallel>], iteration_bounds = array<i64: 1>, scalar_prefetch = 0 : i64, scratch_operands = 0 : i64, tpu.core_type = #tpu.core_type<tc>, window_params = [{transform_indices = @transform_0, window_bounds = array<i64: 3, 384>}, {transform_indices = @transform_1, window_bounds = array<i64: 27, 384>}]} {
    %c0 = arith.constant 0 : index
    %c0_0 = arith.constant 0 : index
    %0 = vector.load %arg1[%c0, %c0_0] : memref<3x384xf32, #tpu.memory_space<vmem>>, vector<3x384xf32>
    %c0_1 = arith.constant 0 : index
    %c0_2 = arith.constant 0 : index
    %1 = vector.load %arg2[%c0_1, %c0_2] : memref<27x384xf32, #tpu.memory_space<vmem>>, vector<3x384xf32>
    tpu.vector_store %arg2[%c0_1, %c0_2], %0 {strides = array<i32>} : memref<27x384xf32, #tpu.memory_space<vmem>>, vector<3x384xf32>,
    %2 = math.sin %0 : vector<3x384xf32>
    %3 = math.cos %0 : vector<3x384xf32>
    %c3 = arith.constant 3 : index
    %c0_3 = arith.constant 0 : index
    %4 = vector.load %arg2[%c3, %c0_3] : memref<27x384xf32, #tpu.memory_space<vmem>>, vector<3x384xf32>
    tpu.vector_store %arg2[%c3, %c0_3], %2 {strides = array<i32>} : memref<27x384xf32, #tpu.memory_space<vmem>>, vector<3x384xf32>,
    %c6 = arith.constant 6 : index
    %c0_4 = arith.constant 0 : index
    %5 = vector.load %arg2[%c6, %c0_4] : memref<27x384xf32, #tpu.memory_space<vmem>>, vector<3x384xf32>
    tpu.vector_store %arg2[%c6, %c0_4], %3 {strides = array<i32>} : memref<27x384xf32, #tpu.memory_space<vmem>>, vector<3x384xf32>,
    %cst = arith.constant 2.000000e+00 : f32
    %6 = vector.broadcast %cst : f32 to vector<3x384xf32>
    %7 = arith.mulf %6, %2 : vector<3x384xf32>
    %8 = arith.mulf %7, %3 : vector<3x384xf32>
    %cst_5 = arith.constant 2.000000e+00 : f32
    %9 = vector.broadcast %cst_5 : f32 to vector<3x384xf32>
    %10 = arith.mulf %9, %3 : vector<3x384xf32>
    %11 = arith.mulf %10, %3 : vector<3x384xf32>
    %cst_6 = arith.constant 1.000000e+00 : f32
    %12 = vector.broadcast %cst_6 : f32 to vector<3x384xf32>
    %13 = arith.subf %11, %12 : vector<3x384xf32>
    %c9 = arith.constant 9 : index
    %c0_7 = arith.constant 0 : index
    %14 = vector.load %arg2[%c9, %c0_7] : memref<27x384xf32, #tpu.memory_space<vmem>>, vector<3x384xf32>
    tpu.vector_store %arg2[%c9, %c0_7], %8 {strides = array<i32>} : memref<27x384xf32, #tpu.memory_space<vmem>>, vector<3x384xf32>,
    %c12 = arith.constant 12 : index
    %c0_8 = arith.constant 0 : index
    %15 = vector.load %arg2[%c12, %c0_8] : memref<27x384xf32, #tpu.memory_space<vmem>>, vector<3x384xf32>
    tpu.vector_store %arg2[%c12, %c0_8], %13 {strides = array<i32>} : memref<27x384xf32, #tpu.memory_space<vmem>>, vector<3x384xf32>,
    %cst_9 = arith.constant 2.000000e+00 : f32
    %16 = vector.broadcast %cst_9 : f32 to vector<3x384xf32>
    %17 = arith.mulf %16, %8 : vector<3x384xf32>
    %18 = arith.mulf %17, %13 : vector<3x384xf32>
    %cst_10 = arith.constant 2.000000e+00 : f32
    %19 = vector.broadcast %cst_10 : f32 to vector<3x384xf32>
    %20 = arith.mulf %19, %13 : vector<3x384xf32>
    %21 = arith.mulf %20, %13 : vector<3x384xf32>
    %cst_11 = arith.constant 1.000000e+00 : f32
    %22 = vector.broadcast %cst_11 : f32 to vector<3x384xf32>
    %23 = arith.subf %21, %22 : vector<3x384xf32>
    %c15 = arith.constant 15 : index
    %c0_12 = arith.constant 0 : index
    %24 = vector.load %arg2[%c15, %c0_12] : memref<27x384xf32, #tpu.memory_space<vmem>>, vector<3x384xf32>
    tpu.vector_store %arg2[%c15, %c0_12], %18 {strides = array<i32>} : memref<27x384xf32, #tpu.memory_space<vmem>>, vector<3x384xf32>,
    %c18 = arith.constant 18 : index
    %c0_13 = arith.constant 0 : index
    %25 = vector.load %arg2[%c18, %c0_13] : memref<27x384xf32, #tpu.memory_space<vmem>>, vector<3x384xf32>
    tpu.vector_store %arg2[%c18, %c0_13], %23 {strides = array<i32>} : memref<27x384xf32, #tpu.memory_space<vmem>>, vector<3x384xf32>,
    %cst_14 = arith.constant 2.000000e+00 : f32
    %26 = vector.broadcast %cst_14 : f32 to vector<3x384xf32>
    %27 = arith.mulf %26, %18 : vector<3x384xf32>
    %28 = arith.mulf %27, %23 : vector<3x384xf32>
    %cst_15 = arith.constant 2.000000e+00 : f32
    %29 = vector.broadcast %cst_15 : f32 to vector<3x384xf32>
    %30 = arith.mulf %29, %23 : vector<3x384xf32>
    %31 = arith.mulf %30, %23 : vector<3x384xf32>
    %cst_16 = arith.constant 1.000000e+00 : f32
    %32 = vector.broadcast %cst_16 : f32 to vector<3x384xf32>
    %33 = arith.subf %31, %32 : vector<3x384xf32>
    %c21 = arith.constant 21 : index
    %c0_17 = arith.constant 0 : index
    %34 = vector.load %arg2[%c21, %c0_17] : memref<27x384xf32, #tpu.memory_space<vmem>>, vector<3x384xf32>
    tpu.vector_store %arg2[%c21, %c0_17], %28 {strides = array<i32>} : memref<27x384xf32, #tpu.memory_space<vmem>>, vector<3x384xf32>,
    %c24 = arith.constant 24 : index
    %c0_18 = arith.constant 0 : index
    %35 = vector.load %arg2[%c24, %c0_18] : memref<27x384xf32, #tpu.memory_space<vmem>>, vector<3x384xf32>
    tpu.vector_store %arg2[%c24, %c0_18], %33 {strides = array<i32>} : memref<27x384xf32, #tpu.memory_space<vmem>>, vector<3x384xf32>,
    return
  }
  func.func @transform_0(%arg0: i32) -> (i32, i32) {
    %c0_i32 = arith.constant 0 : i32
    %c0_i32_0 = arith.constant 0 : i32
    return %c0_i32, %arg0 : i32, i32
  }
  func.func @transform_1(%arg0: i32) -> (i32, i32) {
    %c0_i32 = arith.constant 0 : i32
    %c0_i32_0 = arith.constant 0 : i32
    return %c0_i32, %arg0 : i32, i32
  }
}

</mosaic_0001>

<bundles_post_ra>
// kernel: tpu_custom_call.1
= control target key start
LH: loop header
LB: loop body
LE: loop exit
PB: predicated region body
PF: predicated region fallthrough
CT: control target
= control target key end

     0   :  { %6 = vsyncpa [#allocation3], 0  ;;  %s787_s0 = inlined_call_operand.hbm [shape: f32[3,384], index: 0, kind: input, shape index: {}]   ;;  %s788_s1 = inlined_call_operand.hbm [shape: f32[27,384], index: 1, kind: output, shape index: {}]  }
   0x1   :  { %7 = vsyncpa [#allocation4], 0  ;;  %s676_s6 = smov [#allocation2]  }
   0x2   :  { %s14_s7 = sshll.u32 %s676_s6, 4  ;;  %s15_s7 = int_to_ptr.vmem [resolvable:$true] %s14_s7 }
   0x3   :  { %s640_s8 = scalar_lea.vmem %s15_s7, 192  ;;  %p645_p1 = scmp.lt.s32.totalorder %s15_s7, %s15_s7 }
   0x4   :  { %p641_p0 = scmp.ne.s32.totalorder %s15_s7, %s640_s8  ;;  %p646_p2 = scmp.lt.s32.totalorder %s640_s8, %s640_s8 }
   0x6   :  { %p647_p3 = por %p646_p2, %p645_p1 }
   0x8   :  { %p648_p4 = pnand %p647_p3, %p641_p0 }
   0xa   :  { %651 = shalt.err (!%p648_p4)
}
   0xb   :  { %17 = dma.hbm_to_vmem [thread:$0]  %s787_s0, 192, %s15_s7, [#allocation3]  }
   0xc   :  { %672 = dma.done.wait [#allocation3], 192  }
   0xd   :  { %673 = vsyncadd [#allocation3], 4294967104  ;;  %v699_v0 = vld [vmem:[#allocation2] sm:$0x77]  ;;  %v701_v1 = vld [vmem:[#allocation2 + $0x8] sm:$0x7] }
   0xe   :  { %26 = vst [vmem:[#allocation5] sm:$0x7] %v699_v0  ;;  %v32_v2 = vand.u32 2139095040, %v699_v0  ;;  %v24_v3 = vcombine.high %v699_v0, %v699_v0  ;;  %28 = vst [vmem:[#allocation5 + $0x10] sm:$0x7] %v701_v1  ;;  %v136_v4 = vand.u32 2139095040, %v701_v1 }
   0xf   :  { %v29_v5 = vand.u32 2147483647, %v699_v0  ;;  %v133_v6 = vand.u32 2147483647, %v701_v1  ;;  %v677_v26 = vmov 683565275  }
  0x10   :  { %v33_v7 = vshrl.u32 %v32_v2, 23  ;;  %27 = vst [vmem:[#allocation5 + $0x8] sm:$0x7] %v24_v3  ;;  %v137_v8 = vshrl.u32 %v136_v4, 23  ;;  %v678_v28 = vmov 2475754826  }
  0x11   :  { %v36_v9 = vand.u32 8388607, %v29_v5  ;;  %v140_v10 = vand.u32 8388607, %v133_v6  ;;  %v679_v31 = vmov 2131351028  }
  0x12   :  { %v583_v11 = vadd.s32 4294967169, %v33_v7  ;;  %v587_v12 = vadd.s32 4294967169, %v137_v8  ;;  %v680_v33 = vmov 2102212464   ;;  %v681_v35 = vmov 920167782  }
  0x13   :  { %v37_v15 = vor.u32 8388608, %v36_v9  ;;  %v141_v16 = vor.u32 8388608, %v140_v10  ;;  %v682_v42 = vmov 1326507024   ;;  %vm31_vm14 = vcmp.lt.s32.totalorder %v699_v0, 0  ;;  %s683_s0 = smov [#allocation5]  }
  0x14   :  { %v39_v13 = vadd.s32 1, %v583_v11  ;;  %v143_v14 = vadd.s32 1, %v587_v12  ;;  %vm30_vm15 = vcmp.le.f32.partialorder %v29_v5, 0.7853982  ;;  %s571_s11 = sshll.u32 %s683_s0, 4  ;;  %s572_s11 = int_to_ptr.vmem [resolvable:$true] %s571_s11 }
  0x15   :  { %v715_v22 = vshll.u32 %v37_v15, 8  ;;  %v717_v23 = vshll.u32 %v141_v16, 8  ;;  %s652_s12 = scalar_lea.vmem %s572_s11, 1536  ;;  %p657_p6 = scmp.lt.s32.totalorder %s572_s11, %s572_s11 }
  0x16   :  { %vm40_vm0 = vcmp.gt.s32.totalorder %v39_v13, 0  ;;  %vm144_vm1 = vcmp.gt.s32.totalorder %v143_v14, 0  ;;  %p653_p5 = scmp.ne.s32.totalorder %s572_s11, %s652_s12  ;;  %p658_p7 = scmp.lt.s32.totalorder %s652_s12, %s652_s12 }
  0x17   :  { %v41_v17 = vsel %vm40_vm0, %v39_v13, 0  ;;  %v145_v18 = vsel %vm144_vm1, %v143_v14, 0  ;;  %vm135_vm0 = vcmp.lt.s32.totalorder %v701_v1, 0  ;;  %vm134_vm1 = vcmp.le.f32.partialorder %v133_v6, 0.7853982 }
  0x18   :  { %v43_v19 = vand.u32 31, %v41_v17  ;;  %v147_v20 = vand.u32 31, %v145_v18  ;;  %v42_v21 = vshrl.u32 %v41_v17, 5  ;;  %v719_v25 = vshrl.u32 %v145_v18, 5  ;;  %p659_p8 = por %p658_p7, %p657_p6 }
  0x1a   :  { %v44_v24 = vsub.s32 32, %v43_v19  ;;  %v46_v27 = vshll.u32 %v677_v26, %v43_v19  ;;  %v49_v29 = vshll.u32 %v678_v28, %v43_v19  ;;  %v148_v30 = vsub.s32 32, %v147_v20  ;;  %p660_p9 = pnand %p659_p8, %p653_p5 }
  0x1b   :  { %v52_v32 = vshll.u32 %v679_v31, %v43_v19  ;;  %v55_v34 = vshll.u32 %v680_v33, %v43_v19  ;;  %v58_v36 = vshll.u32 %v681_v35, %v43_v19  ;;  %vm61_vm2 = vcmp.lt.s32.totalorder %v42_v21, 1 }
  0x1c   :  { %v45_v37 = vshrl.u32 %v677_v26, %v44_v24  ;;  %v47_v38 = vshrl.u32 %v678_v28, %v44_v24  ;;  %v50_v39 = vshrl.u32 %v679_v31, %v44_v24  ;;  %v53_v40 = vshrl.u32 %v680_v33, %v44_v24 }
  0x1d   :  { %v56_v41 = vshrl.u32 %v681_v35, %v44_v24  ;;  %v59_v43 = vshrl.u32 %v682_v42, %v44_v24  ;;  %vm62_vm3 = vcmp.lt.s32.totalorder %v42_v21, 2  ;;  %vm64_vm4 = vcmp.lt.s32.totalorder %v42_v21, 4 }
  0x1e   :  { %v48_v44 = vor.u32 %v47_v38, %v46_v27  ;;  %v51_v45 = vor.u32 %v50_v39, %v49_v29  ;;  %v54_v46 = vor.u32 %v53_v40, %v52_v32  ;;  %vm63_vm5 = vcmp.lt.s32.totalorder %v42_v21, 3 }
  0x1f   :  { %v57_v47 = vor.u32 %v56_v41, %v55_v34  ;;  %v60_v48 = vor.u32 %v59_v43, %v58_v36  ;;  %v150_v49 = vshll.u32 %v677_v26, %v147_v20  ;;  %v151_v57 = vshrl.u32 %v678_v28, %v148_v30 }
  0x20   :  { %v65_v50 = vsel %vm61_vm2, %v45_v37, %v48_v44  ;;  %v66_v51 = vsel %vm64_vm4, %v54_v46, 2102212464  ;;  %v69_v52 = vsel %vm61_vm2, %v48_v44, %v51_v45  ;;  %v73_v53 = vsel %vm61_vm2, %v51_v45, %v54_v46 }
  0x21   :  { %v67_v54 = vsel %vm63_vm5, %v51_v45, %v66_v51  ;;  %v70_v55 = vsel %vm64_vm4, %v57_v47, 920167782  ;;  %v74_v56 = vsel %vm64_vm4, %v60_v48, 1326507024  ;;  %v149_v61 = vshrl.u32 %v677_v26, %v148_v30 }
  0x22   :  { %v68_v58 = vsel %vm62_vm3, %v65_v50, %v67_v54  ;;  %v71_v59 = vsel %vm63_vm5, %v54_v46, %v70_v55  ;;  %v75_v60 = vsel %vm63_vm5, %v57_v47, %v74_v56  ;;  %v152_v2 = vor.u32 %v151_v57, %v150_v49 }
  0x23   :  { %v72_v62 = vsel %vm62_vm3, %v69_v52, %v71_v59  ;;  %v76_v63 = vsel %vm62_vm3, %v73_v53, %v75_v60  ;;  %v153_v3 = vshll.u32 %v678_v28, %v147_v20  ;;  %v154_v10 = vshrl.u32 %v679_v31, %v148_v30 }
  0x24   :  { %v725_v4 = vmul.u32.u64.low %v715_v22, %v76_v63  ;;  %v726_v7 = vmul.u32.u64.high %v715_v22, %v76_v63, %v725_v4  ;;  %v729_v8 = vmul.u32.u64.low %v715_v22, %v72_v62  ;;  %v730_v9 = vmul.u32.u64.high %v715_v22, %v72_v62, %v729_v8 }
  0x25   :  { %v156_v11 = vshll.u32 %v679_v31, %v147_v20  ;;  %v157_v12 = vshrl.u32 %v680_v33, %v148_v30  ;;  %v159_v13 = vshll.u32 %v680_v33, %v147_v20  ;;  %v160_v14 = vshrl.u32 %v681_v35, %v148_v30 }
  0x26   :  { %v162_v15 = vshll.u32 %v681_v35, %v147_v20  ;;  %v163_v16 = vshrl.u32 %v682_v42, %v148_v30  ;;  %vm165_vm6 = vcmp.lt.s32.totalorder %v719_v25, 1  ;;  %v84_v17 = vmul.u32 %v715_v22, %v68_v58 }
  0x27   :  { %v155_v18 = vor.u32 %v154_v10, %v153_v3  ;;  %v158_v19 = vor.u32 %v157_v12, %v156_v11  ;;  %vm166_vm7 = vcmp.lt.s32.totalorder %v719_v25, 2  ;;  %vm86_vm8 = vc.u32 %v726_v7, %v729_v8 }
  0x28   :  { %v87_v21 = vadd.s32 1, %v730_v9  ;;  %v161_v24 = vor.u32 %v160_v14, %v159_v13  ;;  %vm167_vm9 = vcmp.lt.s32.totalorder %v719_v25, 3  ;;  %v164_v26 = vor.u32 %v163_v16, %v162_v15 }
  0x29   :  { %vm168_vm10 = vcmp.lt.s32.totalorder %v719_v25, 4  ;;  %v169_v20 = vsel %vm165_vm6, %v149_v61, %v152_v2  ;;  %v173_v22 = vsel %vm165_vm6, %v152_v2, %v155_v18  ;;  %v177_v30 = vsel %vm165_vm6, %v155_v18, %v158_v19 }
  0x2a   :  { %v88_v27 = vsel %vm86_vm8, %v87_v21, %v730_v9  ;;  %v170_v28 = vsel %vm168_vm10, %v158_v19, 2102212464  ;;  %v174_v29 = vsel %vm168_vm10, %v161_v24, 920167782  ;;  %v178_v34 = vsel %vm168_vm10, %v164_v26, 1326507024 }
  0x2b   :  { %v89_v31 = vadd.s32 %v88_v27, %v84_v17  ;;  %v171_v32 = vsel %vm167_vm9, %v155_v18, %v170_v28  ;;  %v175_v33 = vsel %vm167_vm9, %v158_v19, %v174_v29  ;;  %v179_v37 = vsel %vm167_vm9, %v161_v24, %v178_v34 }
  0x2c   :  { %v172_v35 = vsel %vm166_vm7, %v169_v20, %v171_v32  ;;  %v176_v36 = vsel %vm166_vm7, %v173_v22, %v175_v33  ;;  %v180_v39 = vsel %vm166_vm7, %v177_v30, %v179_v37  ;;  %v85_v58 = vadd.s32 %v729_v8, %v726_v7 }
  0x2d   :  { %v90_v38 = vadd.s32 536870912, %v89_v31  ;;  %v753_v40 = vmul.u32.u64.low %v717_v23, %v176_v36  ;;  %v754_v41 = vmul.u32.u64.high %v717_v23, %v176_v36, %v753_v40  ;;  %v188_v45 = vmul.u32 %v717_v23, %v172_v35 }
  0x2e   :  { %v757_v42 = vmul.u32.u64.low %v717_v23, %v180_v39  ;;  %v758_v43 = vmul.u32.u64.high %v717_v23, %v180_v39, %v757_v42  ;;  %vm121_vm8 = vweird.f32 %v699_v0 }
  0x2f   :  { %v91_v44 = vshrl.u32 %v90_v38, 30  ;;  %v191_v47 = vadd.s32 1, %v754_v41 }
  0x30   :  { %vm190_vm11 = vc.u32 %v758_v43, %v753_v40  ;;  %v189_v14 = vadd.s32 %v753_v40, %v758_v43 }
  0x31   :  { %v92_v46 = vshll.u32 %v91_v44, 30  ;;  %v192_v25 = vsel %vm190_vm11, %v191_v47, %v754_v41  ;;  %v115_v26 = vsub.s32 4, %v91_v44 }
  0x32   :  { %v193_v49 = vadd.s32 %v192_v25, %v188_v45 }
  0x33   :  { %v93_v48 = vsub.s32 %v89_v31, %v92_v46  ;;  %v116_v31 = vsel %vm31_vm14, %v115_v26, %v91_v44 }
  0x34   :  { %v194_v51 = vadd.s32 536870912, %v193_v49  ;;  %v118_v34 = vsel %vm30_vm15, 0, %v116_v31 }
  0x35   :  { %v95_v50 = vsub.s32 0, %v93_v48  ;;  %v122_v35 = vadd.s32 3, %v118_v34  ;;  %v330_v40 = vand.u32 3, %v118_v34 }
  0x36   :  { %v195_v53 = vshrl.u32 %v194_v51, 30 }
  0x37   :  { %v584_v52 = vmin.u32 %v95_v50, %v93_v48  ;;  %v123_v39 = vand.u32 3, %v122_v35  ;;  %vm335_vm3 = vcmp.eq.s32.totalorder %v330_v40, 2  ;;  %vm332_vm5 = vcmp.eq.s32.totalorder %v330_v40, 0 }
  0x38   :  { %v196_v55 = vshll.u32 %v195_v53, 30  ;;  %v219_v36 = vsub.s32 4, %v195_v53  ;;  %vm331_vm7 = vcmp.lt.s32.totalorder %v330_v40, 2 }
  0x39   :  { %v97_v54 = vclz %v584_v52  ;;  %vm128_vm2 = vcmp.eq.s32.totalorder %v123_v39, 2  ;;  %vm125_vm4 = vcmp.eq.s32.totalorder %v123_v39, 0  ;;  %vm124_vm6 = vcmp.lt.s32.totalorder %v123_v39, 2 }
  0x3a   :  { %v197_v57 = vsub.s32 %v193_v49, %v196_v55  ;;  %v220_v41 = vsel %vm135_vm0, %v219_v36, %v195_v53 }
  0x3b   :  { %v585_v56 = vadd.s32 4294967294, %v97_v54  ;;  %v222_v42 = vsel %vm134_vm1, 0, %v220_v41 }
  0x3c   :  { %v199_v59 = vsub.s32 0, %v197_v57  ;;  %v226_v46 = vadd.s32 3, %v222_v42  ;;  %v433_v47 = vand.u32 3, %v222_v42 }
  0x3d   :  { %vm586_vm12 = vcmp.lt.s32.totalorder %v585_v56, 0 }
  0x3e   :  { %v100_v23 = vsel %vm586_vm12, 0, %v585_v56  ;;  %v588_v63 = vmin.u32 %v199_v59, %v197_v57  ;;  %v227_v53 = vand.u32 3, %v226_v46  ;;  %vm434_vm9 = vcmp.lt.s32.totalorder %v433_v47, 2 }
  0x3f   :  { %v101_v60 = vsub.s32 32, %v100_v23  ;;  %v102_v61 = vshll.u32 %v93_v48, %v100_v23  ;;  %v105_v62 = vsub.s32 4294967266, %v100_v23  ;;  %vm435_vm10 = vcmp.eq.s32.totalorder %v433_v47, 0 }
  0x40   :  { %v201_v4 = vclz %v588_v63  ;;  %vm438_vm11 = vcmp.eq.s32.totalorder %v433_v47, 2  ;;  %vm232_vm12 = vcmp.eq.s32.totalorder %v227_v53, 2 }
  0x41   :  { %v103_v2 = vshrl.u32 %v85_v58, %v101_v60  ;;  %v106_v3 = vadd.s32 127, %v105_v62 }
  0x42   :  { %v589_v11 = vadd.s32 4294967294, %v201_v4 }
  0x43   :  { %v104_v9 = vor.u32 %v103_v2, %v102_v61  ;;  %v107_v10 = vshll.u32 %v106_v3, 23 }
  0x44   :  { %vm590_vm13 = vcmp.lt.s32.totalorder %v589_v11, 0 }
  0x45   :  { %v108_v12 = vor.u32 4788187, %v107_v10  ;;  %v111_v13 = vcvt.s32.f32 %v104_v9  ;;  %v204_v7 = vsel %vm590_vm13, 0, %v589_v11  ;;  %vm228_vm13 = vcmp.lt.s32.totalorder %v227_v53, 2 }
  0x46   :  { %v205_v8 = vsub.s32 32, %v204_v7  ;;  %v206_v16 = vshll.u32 %v197_v57, %v204_v7  ;;  %v209_v17 = vsub.s32 4294967266, %v204_v7 }
  0x47   :  { %v109_v15 = vand.u32 2147483647, %v108_v12 }
  0x48   :  { %v207_v19 = vshrl.u32 %v189_v14, %v205_v8  ;;  %v210_v21 = vadd.s32 127, %v209_v17 }
  0x49   :  { %v112_v18 = vmul.f32 %v111_v13, %v109_v15 }
  0x4a   :  { %v208_v20 = vor.u32 %v207_v19, %v206_v16  ;;  %v211_v22 = vshll.u32 %v210_v21, 23 }
  0x4b   :  { %v113_v24 = vxor.u32 2147483648, %v112_v18 }
  0x4c   :  { %v212_v29 = vor.u32 4788187, %v211_v22  ;;  %v215_v30 = vcvt.s32.f32 %v208_v20 }
  0x4d   :  { %v114_v27 = vsel %vm31_vm14, %v113_v24, %v112_v18  ;;  %vm229_vm14 = vcmp.eq.s32.totalorder %v227_v53, 0 }
  0x4e   :  { %v117_v28 = vsel %vm30_vm15, %v699_v0, %v114_v27  ;;  %v213_v32 = vand.u32 2147483647, %v212_v29  ;;  %vm225_vm15 = vweird.f32 %v701_v1 }
  0x4f   :  { %624 = vcosq.f32 %v117_v28 }
  0x50   :  { %626 = vsinq.f32 %v117_v28  ;;  %v216_v33 = vmul.f32 %v215_v30, %v213_v32 }
  0x52   :  { %v217_v5 = vxor.u32 2147483648, %v216_v33 }
  0x54   :  { %v218_v37 = vsel %vm135_vm0, %v217_v5, %v216_v33 }
  0x55   :  { %v221_v38 = vsel %vm134_vm1, %v701_v1, %v218_v37 }
  0x56   :  { %628 = vcosq.f32 %v221_v38 }
  0x57   :  { %630 = vsinq.f32 %v221_v38 }
  0x5c   :  { %v625_v43 = vpop.eup %624 }
  0x5d   :  { %v627_v44 = vpop.eup %626  ;;  %v129_v45 = vxor.u32 2147483648, %v625_v43 }
  0x5e   :  { %v126_v6 = vxor.u32 2147483648, %v627_v44 }
  0x5f   :  { %v130_v48 = vsel %vm128_vm2, %v129_v45, %v627_v44  ;;  %v337_v25 = vsel %vm335_vm3, %v129_v45, %v627_v44 }
  0x60   :  { %v127_v49 = vsel %vm125_vm4, %v625_v43, %v126_v6  ;;  %v334_v50 = vsel %vm332_vm5, %v625_v43, %v126_v6 }
  0x61   :  { %v131_v51 = vsel %vm124_vm6, %v127_v49, %v130_v48  ;;  %v338_v52 = vsel %vm331_vm7, %v334_v50, %v337_v25 }
  0x62   :  { %v132_v54 = vsel %vm121_vm8, nan, %v131_v51  ;;  %v339_v55 = vsel %vm121_vm8, nan, %v338_v52 }
  0x63   :  { %v446_v56 = vrot.slane %v132_v54, 5  ;;  %v470_v57 = vmul.f32 2.0, %v132_v54  ;;  %v474_v58 = vmul.f32 2.0, %v339_v55  ;;  %v445_v23 = vcombine.high %v132_v54, %v132_v54  ;;  %v629_v61 = vpop.eup %628 }
  0x64   :  { %v458_v59 = vrot.slane %v339_v55, 2  ;;  %v457_v60 = vcombine.high %v339_v55, %v339_v55  ;;  %v631_v2 = vpop.eup %630  ;;  %v233_v3 = vxor.u32 2147483648, %v629_v61 }
  0x65   :  { %452 = vst [vmem:[#allocation5] sm:$0x38] %v446_v56  ;;  %v476_v0 = vmul.f32 %v474_v58, %v339_v55  ;;  %v447_v62 = vrot.slane %v445_v23, 5  ;;  %v472_v63 = vmul.f32 %v470_v57, %v339_v55  ;;  %v230_v10 = vxor.u32 2147483648, %v631_v2 }
  0x66   :  { %464 = vst [vmem:[#allocation5 + $0x18] ss:$-20 sps:$4 sm:$0xc1] %v458_v59   ;;  %v459_v4 = vrot.slane %v457_v60, 2  ;;  %v234_v13 = vsel %vm232_vm12, %v233_v3, %v631_v2  ;;  %v440_v14 = vsel %vm438_vm11, %v233_v3, %v631_v2 }
  0x67   :  { %v599_v9 = vadd.f32 -1.0, %v476_v0  ;;  %453 = vst [vmem:[#allocation5 + $0x8] sm:$0x38] %v447_v62  ;;  %v483_v11 = vrot.slane %v472_v63, 7  ;;  %v482_v12 = vcombine.high %v472_v63, %v472_v63  ;;  %v501_v15 = vmul.f32 2.0, %v472_v63 }
  0x68   :  { %465 = vst [vmem:[#allocation5 + $0x20] ss:$-20 sps:$4 sm:$0xc1] %v459_v4   ;;  %v231_v7 = vsel %vm229_vm14, %v629_v61, %v230_v10  ;;  %v437_v8 = vsel %vm435_vm10, %v629_v61, %v230_v10 }
  0x69   :  { %499 = vst [vmem:[#allocation5 + $0x20] sm:$0x70] %v599_v9  ;;  %489 = vst [vmem:[#allocation5 + $0x18] sm:$0xe] %v483_v11  ;;  %v484_v16 = vrot.slane %v482_v12, 7  ;;  %v494_v17 = vcombine.low %v599_v9, %v599_v9  ;;  %v235_v18 = vsel %vm228_vm13, %v231_v7, %v234_v13  ;;  %v441_v19 = vsel %vm434_vm9, %v437_v8, %v440_v14 }
  0x6a   :  { %v503_v21 = vmul.f32 %v599_v9, %v501_v15  ;;  %v505_v24 = vmul.f32 2.0, %v599_v9  ;;  %v236_v26 = vsel %vm225_vm15, nan, %v235_v18  ;;  %v442_v20 = vsel %vm225_vm15, nan, %v441_v19 }
  0x6b   :  { %490 = vst [vmem:[#allocation5 + $0x20] sm:$0xe] %v484_v16  ;;  %498 = vst [vmem:[#allocation5 + $0x18] sm:$0x70] %v494_v17  ;;  %v448_v22 = vrot.slane %v236_v26, 5  ;;  %v471_v27 = vmul.f32 2.0, %v236_v26 }
  0x6c   :  { %v475_v28 = vmul.f32 2.0, %v442_v20  ;;  %v460_v29 = vrot.slane %v442_v20, 2  ;;  %v514_v30 = vrot.slane %v503_v21, 1  ;;  %v513_v31 = vcombine.high %v503_v21, %v503_v21 }
  0x6d   :  { %v507_v32 = vmul.f32 %v599_v9, %v505_v24  ;;  %v538_v33 = vmul.f32 2.0, %v503_v21  ;;  %454 = vst [vmem:[#allocation5 + $0x10] sm:$0x38] %v448_v22  ;;  %v473_v35 = vmul.f32 %v471_v27, %v442_v20 }
  0x6e   :  { %v477_v34 = vmul.f32 %v475_v28, %v442_v20  ;;  %466 = vst [vmem:[#allocation5 + $0x28] ss:$-20 sps:$4 sm:$0xc1] %v460_v29   ;;  %520 = vst [vmem:[#allocation5 + $0x30] ss:$-20 sps:$4 sm:$0x83] %v514_v30  }
  0x6f   :  { %v515_v5 = vrot.slane %v513_v31, 1  ;;  %v601_v36 = vadd.f32 -1.0, %v507_v32  ;;  %v485_v1 = vrot.slane %v473_v35, 7  ;;  %v502_v38 = vmul.f32 2.0, %v473_v35 }
  0x70   :  { %v600_v37 = vadd.f32 -1.0, %v477_v34 }
  0x71   :  { %521 = vst [vmem:[#allocation5 + $0x38] ss:$-20 sps:$4 sm:$0x83] %v515_v5   ;;  %v529_v39 = vrot.slane %v601_v36, 6  ;;  %v528_v40 = vcombine.high %v601_v36, %v601_v36  ;;  %v540_v41 = vmul.f32 %v601_v36, %v538_v33  ;;  %v542_v42 = vmul.f32 2.0, %v601_v36 }
  0x72   :  { %491 = vst [vmem:[#allocation5 + $0x28] sm:$0xe] %v485_v1  ;;  %v495_v43 = vcombine.low %v600_v37, %v600_v37  ;;  %v504_v44 = vmul.f32 %v600_v37, %v502_v38  ;;  %v506_v45 = vmul.f32 2.0, %v600_v37 }
  0x73   :  { %535 = vst [vmem:[#allocation5 + $0x30] sm:$0x1c] %v529_v39  ;;  %v530_v46 = vrot.slane %v528_v40, 6  ;;  %v551_v6 = vrot.slane %v540_v41, 3  ;;  %v550_v47 = vcombine.high %v540_v41, %v540_v41  ;;  %v544_v48 = vmul.f32 %v601_v36, %v542_v42 }
  0x74   :  { %500 = vst [vmem:[#allocation5 + $0x28] sm:$0x70] %v495_v43  ;;  %v516_v25 = vrot.slane %v504_v44, 1  ;;  %v508_v49 = vmul.f32 %v600_v37, %v506_v45  ;;  %v539_v50 = vmul.f32 2.0, %v504_v44 }
  0x75   :  { %536 = vst [vmem:[#allocation5 + $0x38] sm:$0x1c] %v530_v46  ;;  %557 = vst [vmem:[#allocation5 + $0x30] sm:$0xe0] %v551_v6  ;;  %v552_v51 = vrot.slane %v550_v47, 3  ;;  %v603_v52 = vadd.f32 -1.0, %v544_v48 }
  0x76   :  { %522 = vst [vmem:[#allocation5 + $0x40] ss:$-20 sps:$4 sm:$0x83] %v516_v25   ;;  %v602_v53 = vadd.f32 -1.0, %v508_v49 }
  0x77   :  { %558 = vst [vmem:[#allocation5 + $0x38] sm:$0xe0] %v552_v51  ;;  %563 = vst [vmem:[#allocation5 + $0x48] sm:$0x7] %v603_v52  ;;  %v561_v54 = vcombine.high %v603_v52, %v603_v52 }
  0x78   :  { %v531_v55 = vrot.slane %v602_v53, 6  ;;  %v541_v56 = vmul.f32 %v602_v53, %v539_v50  ;;  %v543_v57 = vmul.f32 2.0, %v602_v53 }
  0x79   :  { %564 = vst [vmem:[#allocation5 + $0x50] sm:$0x7] %v561_v54 }
  0x7a   :  { %537 = vst [vmem:[#allocation5 + $0x40] sm:$0x1c] %v531_v55  ;;  %v553_v58 = vrot.slane %v541_v56, 3  ;;  %v545_v23 = vmul.f32 %v602_v53, %v543_v57 }
  0x7c   :  { %559 = vst [vmem:[#allocation5 + $0x40] sm:$0xe0] %v553_v58  ;;  %v604_v59 = vadd.f32 -1.0, %v545_v23 }
  0x7e   :  { %565 = vst [vmem:[#allocation5 + $0x58] sm:$0x7] %v604_v59 }
  0x7f   :  { %663 = shalt.err (!%p660_p9)
}
  0x80   :  { %s684_s13 = smov 384   ;;  %s685_s14 = smov 24  }
  0x81   :  { %577 = dma.vmem_to_hbm [thread:$0]  %s572_s11, 1536, %s788_s1, [#allocation4], %s684_s13, %s684_s13, %s685_s14  }
  0x82   :  { %674 = dma.done.wait [#allocation4], 1536  }
  0x83   :  { %675 = vsyncadd [#allocation4], 4294965760 }
  0x84   :  { %581 = vsyncpa [#allocation3], 1 }
  0x85   :  { %582 = vsyncpa [#allocation4], 1 }

</bundles_post_ra>
